<compile_context>
chip_gen: v6e
topology: v6e:2x2x1
jax: 0.10.0
libtpu: 0.0.40
codegen_flags: <defaults>
</compile_context>

<pallas_src>
import functools

import jax
import jax.numpy as jnp
from jax.experimental import pallas as pl
from jax.experimental.pallas import tpu as pltpu

IN_DIM = 28 * 28   # 784
HID_DIM = 64
OUT_DIM = 3

# Hidden dim zero-padded to a full lane width for a dense intermediate; the
# padded columns are ReLU(0 + 0) = 0 and hit zero rows of w2, so math is exact.
H_PAD = 128

DEFAULT_TB = 1024  # batch-tile rows (x tile: 1024 x 784 f32 ~ 3 MiB, x2 buffers)


def _round_up(n, m):
    return ((n + m - 1) // m) * m


def encoder_kernel(x_ref, w1_ref, b1_ref, w2_ref, b2_ref, o_ref):
    # x : (TB, 784) f32   (streamed, double-buffered per grid step)
    # w1: (784, 128) bf16 (resident)   b1: (1, 128) f32
    # w2: (128, 3)   bf16 (resident)   b2: (1, 3)   f32
    # o : (TB, 3)    f32
    x = x_ref[...].astype(jnp.bfloat16)          # cast in VMEM, right before MXU
    # Layer 1: Linear(784->64) + ReLU (bf16 MXU, f32 accumulation)
    h = jnp.dot(x, w1_ref[...], preferred_element_type=jnp.float32)
    h = jnp.maximum(h + b1_ref[...], 0.0)        # bias + ReLU on the VPU
    # Layer 2: Linear(64->3), compact 3-wide output (masked store is cheap here)
    y = jnp.dot(h.astype(jnp.bfloat16), w2_ref[...],
                preferred_element_type=jnp.float32)
    o_ref[...] = (y + b2_ref[...]).astype(o_ref.dtype)


def prepare_params(w1, b1, w2, b2):
    """One-time parameter pad/cast, hoisted out of the per-call forward.

    w1: (784, 64), b1: (1, 64), w2: (64, 3), b2: (1, 3)  (in, out) layout.
    """
    w1_p = jnp.pad(w1, ((0, 0), (0, H_PAD - HID_DIM))).astype(jnp.bfloat16)
    b1_p = jnp.pad(b1, ((0, 0), (0, H_PAD - HID_DIM))).astype(jnp.float32)
    w2_p = jnp.pad(w2, ((0, H_PAD - HID_DIM), (0, 0))).astype(jnp.bfloat16)
    b2_p = b2.astype(jnp.float32)
    return w1_p, b1_p, w2_p, b2_p


@functools.partial(jax.jit, static_argnames=("tb",))
def encoder_forward(x, w1_p, b1_p, w2_p, b2_p, tb=DEFAULT_TB):
    """x: (B, 784) f32; params from prepare_params(). Returns (B, 3) f32."""
    B = x.shape[0]
    tb = min(tb, _round_up(B, 16))     # keep tb a multiple of 16, avoid over-pad
    b_pad = _round_up(B, tb)
    if b_pad != B:                     # only batch padding, no K / lane padding
        x = jnp.pad(x, ((0, b_pad - B), (0, 0)))

    grid = (b_pad // tb,)

    # True (unpadded) work for XLA's scheduler.
    flops = 2 * B * (IN_DIM * HID_DIM + HID_DIM * OUT_DIM)
    bytes_accessed = (B * IN_DIM * 4          # x (f32 stream)
                      + w1_p.size * 2 + w2_p.size * 2
                      + b1_p.size * 4 + b2_p.size * 4
                      + B * OUT_DIM * 4)      # compact output

    out = pl.pallas_call(
        encoder_kernel,
        out_shape=jax.ShapeDtypeStruct((b_pad, OUT_DIM), jnp.float32),
        grid=grid,
        in_specs=[
            # Streamed, double-buffered batch tiles of x (K=784 == full dim).
            pl.BlockSpec((tb, IN_DIM), lambda i: (i, 0)),
            # Weights / biases: constant index_map -> resident in VMEM.
            pl.BlockSpec((IN_DIM, H_PAD), lambda i: (0, 0)),
            pl.BlockSpec((1, H_PAD), lambda i: (0, 0)),
            pl.BlockSpec((H_PAD, OUT_DIM), lambda i: (0, 0)),
            pl.BlockSpec((1, OUT_DIM), lambda i: (0, 0)),
        ],
        # Compact (tb, 3) output block (last dim == full array dim -> legal).
        out_specs=pl.BlockSpec((tb, OUT_DIM), lambda i: (i, 0)),
        compiler_params=pltpu.CompilerParams(
            # Independent batch tiles -> shard across TensorCores where present.
            dimension_semantics=("parallel",),
            # Explicit scoped-VMEM limit so tb up to ~2048 also fits on v5e.
            vmem_limit_bytes=32 * 1024 * 1024,
        ),
        cost_estimate=pl.CostEstimate(
            flops=flops, transcendentals=0, bytes_accessed=bytes_accessed),
    )(x, w1_p, b1_p, w2_p, b2_p)

    if b_pad != B:
        out = out[:B]
    return out


def init_params(key):
    # Deterministic init mimicking PyTorch nn.Linear defaults:
    # U(-1/sqrt(fan_in), 1/sqrt(fan_in)) for both weight and bias.
    k1, k2, k3, k4 = jax.random.split(key, 4)
    bound1 = 1.0 / jnp.sqrt(IN_DIM)
    bound2 = 1.0 / jnp.sqrt(HID_DIM)
    w1 = jax.random.uniform(k1, (IN_DIM, HID_DIM), jnp.float32, -bound1, bound1)
    b1 = jax.random.uniform(k2, (1, HID_DIM), jnp.float32, -bound1, bound1)
    w2 = jax.random.uniform(k3, (HID_DIM, OUT_DIM), jnp.float32, -bound2, bound2)
    b2 = jax.random.uniform(k4, (1, OUT_DIM), jnp.float32, -bound2, bound2)
    return w1, b1, w2, b2


if __name__ == "__main__":
    key = jax.random.PRNGKey(0)
    kx, kp = jax.random.split(key)

    B = 16  # small batch for the check; kernel tiles any batch size
    x = jax.random.normal(kx, (B, IN_DIM), jnp.float32)
    w1, b1, w2, b2 = init_params(kp)

    # One-time parameter preparation (pad hidden to 128, cast weights to bf16).
    w1_p, b1_p, w2_p, b2_p = prepare_params(w1, b1, w2, b2)

    out = encoder_forward(x, w1_p, b1_p, w2_p, b2_p)
    out = jax.block_until_ready(out)
    assert out.shape == (B, OUT_DIM)

    # Reference matching the kernel's bf16 MXU passes + f32 accumulation.
    xb, w1b, w2b = (x.astype(jnp.bfloat16), w1.astype(jnp.bfloat16),
                    w2.astype(jnp.bfloat16))
    h_ref = jnp.maximum(
        jnp.dot(xb, w1b, preferred_element_type=jnp.float32) + b1, 0.0)
    ref_bf16 = jnp.dot(h_ref.astype(jnp.bfloat16), w2b,
                       preferred_element_type=jnp.float32) + b2
    assert jnp.allclose(out, ref_bf16, atol=1e-2, rtol=1e-2)

    # Sanity check vs the pure-f32 PyTorch-equivalent forward (bf16 tolerance).
    ref_f32 = jnp.maximum(x @ w1 + b1, 0.0) @ w2 + b2
    assert jnp.allclose(out, ref_f32, atol=5e-2, rtol=5e-2)

    print("KERNEL_OK")
</pallas_src>

<mosaic_0001>
module attributes {stable_mosaic.version = 11 : i64} {
  func.func @encoder_kernel(%arg0: i32, %arg1: memref<16x784xf32, #tpu.memory_space<vmem>>, %arg2: memref<784x128xbf16, #tpu.memory_space<vmem>>, %arg3: memref<1x128xf32, #tpu.memory_space<vmem>>, %arg4: memref<128x3xbf16, #tpu.memory_space<vmem>>, %arg5: memref<1x3xf32, #tpu.memory_space<vmem>>, %arg6: memref<16x3xf32, #tpu.memory_space<vmem>>) attributes {dimension_semantics = [#tpu.dimension_semantics<parallel>], iteration_bounds = array<i64: 1>, scalar_prefetch = 0 : i64, scratch_operands = 0 : i64, tpu.core_type = #tpu.core_type<tc>, window_params = [{transform_indices = @transform_0, window_bounds = array<i64: 16, 784>}, {pipeline_mode = #tpu.pipeline_mode<synchronous>, transform_indices = @transform_1, window_bounds = array<i64: 784, 128>}, {pipeline_mode = #tpu.pipeline_mode<synchronous>, transform_indices = @transform_2, window_bounds = array<i64: 1, 128>}, {pipeline_mode = #tpu.pipeline_mode<synchronous>, transform_indices = @transform_3, window_bounds = array<i64: 128, 3>}, {pipeline_mode = #tpu.pipeline_mode<synchronous>, transform_indices = @transform_4, window_bounds = array<i64: 1, 3>}, {transform_indices = @transform_5, window_bounds = array<i64: 16, 3>}]} {
    %c0 = arith.constant 0 : index
    %c0_0 = arith.constant 0 : index
    %0 = vector.load %arg1[%c0, %c0_0] : memref<16x784xf32, #tpu.memory_space<vmem>>, vector<16x784xf32>
    %1 = arith.truncf %0 : vector<16x784xf32> to vector<16x784xbf16>
    %c0_1 = arith.constant 0 : index
    %c0_2 = arith.constant 0 : index
    %2 = vector.load %arg2[%c0_1, %c0_2] : memref<784x128xbf16, #tpu.memory_space<vmem>>, vector<784x128xbf16>
    %cst = arith.constant dense<0.000000e+00> : vector<16x128xf32>
    %3 = tpu.matmul %1, %2, %cst {dimension_numbers = #tpu.dot_dimension_numbers<[1], [0], [0], [1], [0, 0, 1, 1], [], []>} : vector<16x784xbf16>, vector<784x128xbf16>, vector<16x128xf32> -> vector<16x128xf32>
    %c0_3 = arith.constant 0 : index
    %c0_4 = arith.constant 0 : index
    %4 = vector.load %arg3[%c0_3, %c0_4] : memref<1x128xf32, #tpu.memory_space<vmem>>, vector<1x128xf32>
    %5 = vector.broadcast %4 : vector<1x128xf32> to vector<16x128xf32>
    %6 = arith.addf %3, %5 : vector<16x128xf32>
    %cst_5 = arith.constant 0.000000e+00 : f32
    %7 = vector.broadcast %cst_5 : f32 to vector<16x128xf32>
    %8 = arith.maximumf %6, %7 : vector<16x128xf32>
    %9 = arith.truncf %8 : vector<16x128xf32> to vector<16x128xbf16>
    %c0_6 = arith.constant 0 : index
    %c0_7 = arith.constant 0 : index
    %10 = vector.load %arg4[%c0_6, %c0_7] : memref<128x3xbf16, #tpu.memory_space<vmem>>, vector<128x3xbf16>
    %cst_8 = arith.constant dense<0.000000e+00> : vector<16x3xf32>
    %11 = tpu.matmul %9, %10, %cst_8 {dimension_numbers = #tpu.dot_dimension_numbers<[1], [0], [0], [1], [0, 0, 1, 1], [], []>} : vector<16x128xbf16>, vector<128x3xbf16>, vector<16x3xf32> -> vector<16x3xf32>
    %c0_9 = arith.constant 0 : index
    %c0_10 = arith.constant 0 : index
    %12 = vector.load %arg5[%c0_9, %c0_10] : memref<1x3xf32, #tpu.memory_space<vmem>>, vector<1x3xf32>
    %13 = vector.broadcast %12 : vector<1x3xf32> to vector<16x3xf32>
    %14 = arith.addf %11, %13 : vector<16x3xf32>
    %c0_11 = arith.constant 0 : index
    %c0_12 = arith.constant 0 : index
    %15 = vector.load %arg6[%c0_11, %c0_12] : memref<16x3xf32, #tpu.memory_space<vmem>>, vector<16x3xf32>
    tpu.vector_store %arg6[%c0_11, %c0_12], %14 {strides = array<i32>} : memref<16x3xf32, #tpu.memory_space<vmem>>, vector<16x3xf32>,
    return
  }
  func.func @transform_0(%arg0: i32) -> (i32, i32) {
    %c0_i32 = arith.constant 0 : i32
    %c0_i32_0 = arith.constant 0 : i32
    return %arg0, %c0_i32 : i32, i32
  }
  func.func @transform_1(%arg0: i32) -> (i32, i32) {
    %c0_i32 = arith.constant 0 : i32
    %c0_i32_0 = arith.constant 0 : i32
    %c0_i32_1 = arith.constant 0 : i32
    return %c0_i32, %c0_i32_0 : i32, i32
  }
  func.func @transform_2(%arg0: i32) -> (i32, i32) {
    %c0_i32 = arith.constant 0 : i32
    %c0_i32_0 = arith.constant 0 : i32
    %c0_i32_1 = arith.constant 0 : i32
    return %c0_i32, %c0_i32_0 : i32, i32
  }
  func.func @transform_3(%arg0: i32) -> (i32, i32) {
    %c0_i32 = arith.constant 0 : i32
    %c0_i32_0 = arith.constant 0 : i32
    %c0_i32_1 = arith.constant 0 : i32
    return %c0_i32, %c0_i32_0 : i32, i32
  }
  func.func @transform_4(%arg0: i32) -> (i32, i32) {
    %c0_i32 = arith.constant 0 : i32
    %c0_i32_0 = arith.constant 0 : i32
    %c0_i32_1 = arith.constant 0 : i32
    return %c0_i32, %c0_i32_0 : i32, i32
  }
  func.func @transform_5(%arg0: i32) -> (i32, i32) {
    %c0_i32 = arith.constant 0 : i32
    %c0_i32_0 = arith.constant 0 : i32
    return %arg0, %c0_i32 : i32, i32
  }
}

</mosaic_0001>

<bundles_post_ra>
// kernel: encoder_forward.1
= control target key start
LH: loop header
LB: loop body
LE: loop exit
PB: predicated region body
PF: predicated region fallthrough
CT: control target
= control target key end

     0   :  { %10 = vsyncpa [#allocation3], 0  ;;  %s1126_s0 = inlined_call_operand.hbm [shape: f32[16,784], index: 0, kind: input, shape index: {}]   ;;  %s1127_s1 = inlined_call_operand.hbm [shape: bf16[784,128], index: 1, kind: input, shape index: {}]   ;;  %s1128_s2 = inlined_call_operand.vmem [shape: f32[1,128], index: 2, kind: input, shape index: {}]   ;;  %s1129_s3 = inlined_call_operand.vmem [shape: bf16[128,3], index: 3, kind: input, shape index: {}]   ;;  %s1130_s4 = inlined_call_operand.vmem [shape: f32[1,3], index: 4, kind: input, shape index: {}]   ;;  %s1131_s5 = inlined_call_operand.vmem [shape: f32[16,3], index: 5, kind: output, shape index: {}]  }
   0x1   :  { %11 = vsyncpa [#allocation5], 0  ;;  %s1033_s18 = smov [#allocation2]  }
   0x2   :  { %s17_s19 = sshll.u32 %s1033_s18, 4  ;;  %s18_s19 = int_to_ptr.vmem [resolvable:$true] %s17_s19 }
   0x3   :  { %s997_s20 = scalar_lea.vmem %s18_s19, 1792  ;;  %p1002_p1 = scmp.lt.s32.totalorder %s18_s19, %s18_s19 }
   0x4   :  { %p998_p0 = scmp.ne.s32.totalorder %s18_s19, %s997_s20  ;;  %p1003_p2 = scmp.lt.s32.totalorder %s997_s20, %s997_s20 }
   0x6   :  { %p1004_p3 = por %p1003_p2, %p1002_p1 }
   0x8   :  { %p1005_p4 = pnand %p1004_p3, %p998_p0 }
   0xa   :  { %1008 = shalt.err (!%p1005_p4)
}
   0xb   :  { %s1034_s21 = smov 896   ;;  %s1035_s22 = smov 56  }
   0xc   :  { %23 = dma.hbm_to_vmem [thread:$0]  %s1126_s0, 1792, %s18_s19, [#allocation3], %s1034_s21, %s1034_s21, %s1035_s22  }
   0xd   :  { %s1036_s25 = smov [#allocation4]  }
   0xe   :  { %s29_s26 = sshll.u32 %s1036_s25, 4  ;;  %s30_s26 = int_to_ptr.vmem [resolvable:$true] %s29_s26 }
   0xf   :  { %s1017_s27 = scalar_lea.vmem %s30_s26, 6272  ;;  %p1022_p6 = scmp.lt.s32.totalorder %s30_s26, %s30_s26 }
  0x10   :  { %p1018_p5 = scmp.ne.s32.totalorder %s30_s26, %s1017_s27  ;;  %p1023_p7 = scmp.lt.s32.totalorder %s1017_s27, %s1017_s27 }
  0x12   :  { %p1024_p8 = por %p1023_p7, %p1022_p6 }
  0x14   :  { %p1025_p9 = pnand %p1024_p8, %p1018_p5 }
  0x16   :  { %1028 = shalt.err (!%p1025_p9)
}
  0x17   :  { %s1037_s28 = smov 64   ;;  %s1038_s29 = smov 4  }
  0x18   :  { %35 = dma.hbm_to_vmem [thread:$0]  %s1127_s1, 6272, %s30_s26, [#allocation5], %s1037_s28, %s1037_s28, %s1038_s29  }
  0x19   :  { %1029 = dma.done.wait [#allocation3], 1792  }
  0x1a   :  { %1030 = vsyncadd [#allocation3], 4294965504 }
  0x1b   :  { %1031 = dma.done.wait [#allocation5], 6272  }
  0x1c   :  { %1032 = vsyncadd [#allocation5], 4294961024  ;;  %v932_v0 = vld [vmem:[#allocation4 + $0x78] sm:$0xff]   ;;  %v936_v4 = vld [vmem:[#allocation4 + $0x70] sm:$0xff]   ;;  %v1039_v43 = vmov 0.0   ;;  %vm1040_vm0 = vmmov 0  }
  0x1d   :  { %v933_v1 = vld [vmem:[#allocation4 + $0x38] sm:$0xff]   ;;  %821 = vmatprep.subr.bf16.mxu0 %v932_v0  ;;  %v937_v5 = vld [vmem:[#allocation4 + $0x30] sm:$0xff]   ;;  %v940_v8 = vld [vmem:[#allocation4 + $0x68] sm:$0xff]   ;;  %vm469_vm1 = vcmask 130048   ;;  %vm752_vm2 = vcmask 23552  }
  0x1e   :  { %v934_v2 = vld [vmem:[#allocation4 + $0xf8] sm:$0xff]   ;;  %822 = vmatpush3.bf16.msra.mxu0 %v933_v1  ;;  %v938_v6 = vld [vmem:[#allocation4 + $0xf0] sm:$0xff]   ;;  %v941_v9 = vld [vmem:[#allocation4 + $0x28] sm:$0xff]  }
  0x1f   :  { %v935_v3 = vld [vmem:[#allocation4 + $0xb8] sm:$0xff]   ;;  %843 = vmatprep.subr.bf16.mxu1 %v934_v2  ;;  %823 = vmatprep.subr.bf16.mxu0 %v936_v4  ;;  %v939_v7 = vld [vmem:[#allocation4 + $0xb0] sm:$0xff]   ;;  %v942_v10 = vld [vmem:[#allocation4 + $0xe8] sm:$0xff]  }
  0x20   :  { %844 = vmatpush3.bf16.msra.mxu1 %v935_v3  ;;  %v943_v11 = vld [vmem:[#allocation4 + $0xa8] sm:$0xff]   ;;  %v944_v12 = vld [vmem:[#allocation4 + $0x60] sm:$0xff]   ;;  %v948_v16 = vld [vmem:[#allocation4 + $0x58] sm:$0xff]  }
  0x21   :  { %845 = vmatprep.subr.bf16.mxu1 %v938_v6  ;;  %v945_v13 = vld [vmem:[#allocation4 + $0x20] sm:$0xff]   ;;  %v949_v17 = vld [vmem:[#allocation4 + $0x18] sm:$0xff]   ;;  %v952_v20 = vld [vmem:[#allocation4 + $0x50] sm:$0xff]  }
  0x22   :  { %824 = vmatpush3.bf16.msra.mxu0 %v937_v5  ;;  %v946_v14 = vld [vmem:[#allocation4 + $0xe0] sm:$0xff]   ;;  %v950_v18 = vld [vmem:[#allocation4 + $0xd8] sm:$0xff]   ;;  %v953_v21 = vld [vmem:[#allocation4 + $0x10] sm:$0xff]  }
  0x23   :  { %825 = vmatprep.subr.bf16.mxu0 %v940_v8  ;;  %v947_v15 = vld [vmem:[#allocation4 + $0xa0] sm:$0xff]   ;;  %v951_v19 = vld [vmem:[#allocation4 + $0x98] sm:$0xff]   ;;  %v954_v22 = vld [vmem:[#allocation4 + $0xd0] sm:$0xff]  }
  0x24   :  { %846 = vmatpush3.bf16.msra.mxu1 %v939_v7  ;;  %v955_v23 = vld [vmem:[#allocation4 + $0x90] sm:$0xff]   ;;  %v956_v24 = vld [vmem:[#allocation4 + $0x48] sm:$0xff]   ;;  %v960_v28 = vld [vmem:[#allocation4 + $0x40] sm:$0xff]  }
  0x25   :  { %847 = vmatprep.subr.bf16.mxu1 %v942_v10  ;;  %v957_v25 = vld [vmem:[#allocation4 + $0x8] sm:$0xff]   ;;  %v961_v29 = vld [vmem:[#allocation4] sm:$0xff]   ;;  %v50_v31 = vld [vmem:[#allocation2 + $0x8] sm:$0xff] }
  0x26   :  { %826 = vmatpush3.bf16.msra.mxu0 %v941_v9  ;;  %v958_v26 = vld [vmem:[#allocation4 + $0xc8] sm:$0xff]   ;;  %v962_v30 = vld [vmem:[#allocation4 + $0xc0] sm:$0xff]   ;;  %v57_v32 = vld [vmem:[#allocation2 + $0x40] sm:$0xff] }
  0x27   :  { %827 = vmatprep.subr.bf16.mxu0 %v944_v12  ;;  %v959_v27 = vld [vmem:[#allocation4 + $0x88] sm:$0xff]   ;;  %v64_v33 = vpack.c.bf16 %v57_v32, %v50_v31  ;;  %v963_v34 = vld [vmem:[#allocation4 + $0x80] sm:$0xff]   ;;  %v49_v35 = vld [vmem:[#allocation2] sm:$0xff] }
  0x28   :  { %848 = vmatpush3.bf16.msra.mxu1 %v943_v11  ;;  %v56_v36 = vld [vmem:[#allocation2 + $0x38] sm:$0xff]  ;;  %v964_v38 = vld [vmem:[#allocation4 + $0x178] sm:$0xff]   ;;  %v59_v40 = vld [vmem:[#allocation2 + $0x50] sm:$0xff] }
  0x29   :  { %849 = vmatprep.subr.bf16.mxu1 %v946_v14  ;;  %505 = vmatprep.mubr.bf16.mxu0 %v64_v33  ;;  %v63_v37 = vpack.c.bf16 %v56_v36, %v49_v35  ;;  %v52_v39 = vld [vmem:[#allocation2 + $0x18] sm:$0xff]  ;;  %v965_v42 = vld [vmem:[#allocation4 + $0x138] sm:$0xff]   ;;  %v51_v44 = vld [vmem:[#allocation2 + $0x10] sm:$0xff] }
  0x2a   :  { %828 = vmatpush3.bf16.msra.mxu0 %v945_v13  ;;  %v66_v41 = vpack.c.bf16 %v59_v40, %v52_v39  ;;  %v58_v45 = vld [vmem:[#allocation2 + $0x48] sm:$0xff]  ;;  %v966_v47 = vld [vmem:[#allocation4 + $0x170] sm:$0xff]   ;;  %v968_v49 = vld [vmem:[#allocation4 + $0x168] sm:$0xff]  }
  0x2b   :  { %829 = vmatprep.subr.bf16.mxu0 %v948_v16  ;;  %v65_v46 = vpack.c.bf16 %v58_v45, %v51_v44  ;;  %v967_v48 = vld [vmem:[#allocation4 + $0x130] sm:$0xff]   ;;  %v969_v50 = vld [vmem:[#allocation4 + $0x128] sm:$0xff]   ;;  %v970_v51 = vld [vmem:[#allocation4 + $0x160] sm:$0xff]  }
  0x2c   :  { %850 = vmatpush3.bf16.msra.mxu1 %v947_v15  ;;  %546 = vmatprep.mubr.bf16.mxu1 %v66_v41  ;;  %v971_v52 = vld [vmem:[#allocation4 + $0x120] sm:$0xff]   ;;  %v972_v53 = vld [vmem:[#allocation4 + $0x158] sm:$0xff]   ;;  %v974_v55 = vld [vmem:[#allocation4 + $0x150] sm:$0xff]  }
  0x2d   :  { %851 = vmatprep.subr.bf16.mxu1 %v950_v18  ;;  %v973_v54 = vld [vmem:[#allocation4 + $0x118] sm:$0xff]   ;;  %v980_v56 = vld [vmem:[#allocation4 + $0x180] sm:$0xff]   ;;  %v975_v58 = vld [vmem:[#allocation4 + $0x110] sm:$0xff]  }
  0x2e   :  { %830 = vmatpush3.bf16.msra.mxu0 %v949_v17  ;;  %v54_v57 = vld [vmem:[#allocation2 + $0x28] sm:$0xff]  ;;  %v976_v59 = vld [vmem:[#allocation4 + $0x148] sm:$0xff]   ;;  %v61_v60 = vld [vmem:[#allocation2 + $0x60] sm:$0xff] }
  0x2f   :  { %831 = vmatprep.subr.bf16.mxu0 %v952_v20  ;;  %v68_v61 = vpack.c.bf16 %v61_v60, %v54_v57  ;;  %v55_v62 = vld [vmem:[#allocation2 + $0x30] sm:$0xff]  ;;  %v62_v63 = vld [vmem:[#allocation2 + $0x68] sm:$0xff]  ;;  %v977_v1 = vld [vmem:[#allocation4 + $0x108] sm:$0xff]  }
  0x30   :  { %852 = vmatpush3.bf16.msra.mxu1 %v951_v19  ;;  %v69_v0 = vpack.c.bf16 %v62_v63, %v55_v62  ;;  %v978_v2 = vld [vmem:[#allocation4 + $0x140] sm:$0xff]   ;;  %v53_v4 = vld [vmem:[#allocation2 + $0x20] sm:$0xff]  ;;  %v60_v5 = vld [vmem:[#allocation2 + $0x58] sm:$0xff] }
  0x31   :  { %853 = vmatprep.subr.bf16.mxu1 %v954_v22  ;;  %v979_v3 = vld [vmem:[#allocation4 + $0x100] sm:$0xff]   ;;  %v67_v6 = vpack.c.bf16 %v60_v5, %v53_v4  ;;  %v981_v7 = vld [vmem:[%s1129_s3 + $0x38] sm:$0xff]   ;;  %v983_v9 = vld [vmem:[%s1129_s3 + $0x28] sm:$0xff]  }
  0x32   :  { %832 = vmatpush3.bf16.msra.mxu0 %v953_v21  ;;  %v982_v8 = vld [vmem:[%s1129_s3 + $0x30] sm:$0xff]   ;;  %v984_v10 = vld [vmem:[%s1129_s3 + $0x20] sm:$0xff]   ;;  %v985_v11 = vld [vmem:[%s1129_s3 + $0x18] sm:$0xff]  }
  0x33   :  { %833 = vmatprep.subr.bf16.mxu0 %v956_v24  ;;  %v986_v12 = vld [vmem:[%s1129_s3 + $0x10] sm:$0xff]   ;;  %v987_v13 = vld [vmem:[%s1129_s3 + $0x8] sm:$0xff]   ;;  %v988_v14 = vld [vmem:[%s1129_s3] sm:$0xff]  }
  0x34   :  { %854 = vmatpush3.bf16.msra.mxu1 %v955_v23 }
  0x35   :  { %855 = vmatprep.subr.bf16.mxu1 %v958_v26 }
  0x36   :  { %834 = vmatpush3.bf16.msra.mxu0 %v957_v25 }
  0x37   :  { %835 = vmatprep.subr.bf16.mxu0 %v960_v28 }
  0x38   :  { %856 = vmatpush3.bf16.msra.mxu1 %v959_v27  ;;  %v761_v27 = vld [vmem:[%s1128_s2] ss:$0 sm:$0xff] }
  0x39   :  { %857 = vmatprep.subr.bf16.mxu1 %v962_v30 }
  0x3a   :  { %836 = vmatpush3.bf16.msra.mxu0 %v961_v29 }
  0x3b   :  { %865 = vmatprep.subr.bf16.mxu0 %v964_v38 }
  0x3c   :  { %858 = vmatpush3.bf16.msra.mxu1 %v963_v34 }
  0x3d   :  { %898 = vmatprep.subr.bf16.mxu1 %v1039_v43  ;;  %506 = vmatmul.mubr.bf16.vlgmr.msra.gmra.mxu0 %v63_v37 }
  0x3e   :  { %866 = vmatpush3.bf16.msra.mxu0 %v965_v42  ;;  %587 = vmatprep.mubr.bf16.mxu0 %v68_v61 }
  0x3f   :  { %547 = vmatmul.mubr.bf16.vlgmr.msra.gmra.mxu1 %v65_v46  ;;  %867 = vmatprep.subr.bf16.mxu0 %v966_v47 }
  0x40   :  { %900 = vmatprep.mubr.msk.bf16.mxu1 %vm1040_vm0, %v1039_v43  ;;  %899 = vmatpush3.bf16.msra.mxu1 %v980_v56 }
  0x41   :  { %904 = vmatprep.subr.bf16.mxu1 %v1039_v43 }
  0x42   :  { %868 = vmatpush3.bf16.msra.mxu0 %v967_v48 }
  0x43   :  { %869 = vmatprep.subr.bf16.mxu0 %v968_v49  ;;  %v812_v49 = vld [vmem:[%s1130_s4] ss:$0 sm:$0xff] }
  0x46   :  { %870 = vmatpush3.bf16.msra.mxu0 %v969_v50 }
  0x47   :  { %871 = vmatprep.subr.bf16.mxu0 %v970_v51  ;;  %901 = vmatmul.mubr.msk.bf16.vlgmr.msra.gmra.mxu1 %vm469_vm1, %v69_v0 }
  0x48   :  { %920 = vmatprep.mubr.msk.bf16.mxu1 %vm1040_vm0, %v1039_v43  ;;  %905 = vmatpush3.bf16.msra.mxu1 %v981_v7 }
  0x49   :  { %906 = vmatprep.subr.bf16.mxu1 %v1039_v43 }
  0x4a   :  { %872 = vmatpush3.bf16.msra.mxu0 %v971_v52 }
  0x4b   :  { %873 = vmatprep.subr.bf16.mxu0 %v972_v53 }
  0x4c   :  { %907 = vmatpush3.bf16.msra.mxu1 %v982_v8 }
  0x4d   :  { %908 = vmatprep.subr.bf16.mxu1 %v1039_v43 }
  0x4e   :  { %874 = vmatpush3.bf16.msra.mxu0 %v973_v54 }
  0x4f   :  { %875 = vmatprep.subr.bf16.mxu0 %v974_v55 }
  0x50   :  { %909 = vmatpush3.bf16.msra.mxu1 %v983_v9 }
  0x51   :  { %910 = vmatprep.subr.bf16.mxu1 %v1039_v43 }
  0x52   :  { %876 = vmatpush3.bf16.msra.mxu0 %v975_v58 }
  0x53   :  { %877 = vmatprep.subr.bf16.mxu0 %v976_v59 }
  0x54   :  { %911 = vmatpush3.bf16.msra.mxu1 %v984_v10 }
  0x55   :  { %912 = vmatprep.subr.bf16.mxu1 %v1039_v43 }
  0x56   :  { %878 = vmatpush3.bf16.msra.mxu0 %v977_v1 }
  0x57   :  { %879 = vmatprep.subr.bf16.mxu0 %v978_v2 }
  0x58   :  { %913 = vmatpush3.bf16.msra.mxu1 %v985_v11 }
  0x59   :  { %914 = vmatprep.subr.bf16.mxu1 %v1039_v43 }
  0x5a   :  { %880 = vmatpush3.bf16.msra.mxu0 %v979_v3 }
  0x5c   :  { %915 = vmatpush3.bf16.msra.mxu1 %v986_v12 }
  0x5d   :  { %588 = vmatmul.mubr.bf16.vlgmr.msra.gmra.mxu0 %v67_v6  ;;  %916 = vmatprep.subr.bf16.mxu1 %v1039_v43 }
  0x60   :  { %917 = vmatpush3.bf16.msra.mxu1 %v987_v13 }
  0x61   :  { %918 = vmatprep.subr.bf16.mxu1 %v1039_v43 }
  0x64   :  { %919 = vmatpush3.bf16.msra.mxu1 %v988_v14 }
  0xfd   :  { %v837_v18 = vpop.f32.mrf.mxu0 }
  0xff   :  { %v859_v15 = vpop.f32.mrf.mxu1  ;;  %v838_v20 = vpop.f32.mrf.mxu0 }
 0x100   :  { %v839_v26 = vadd.f32 %v838_v20, %v837_v18 }
 0x101   :  { %v860_v16 = vpop.f32.mrf.mxu1  ;;  %v840_v23 = vpop.f32.mrf.mxu0 }
 0x102   :  { %v508_v29 = vadd.f32 %v839_v26, %v761_v27  ;;  %v861_v30 = vadd.f32 %v860_v16, %v859_v15 }
 0x103   :  { %v862_v17 = vpop.f32.mrf.mxu1  ;;  %v841_v28 = vpop.f32.mrf.mxu0 }
 0x104   :  { %v842_v31 = vadd.f32 %v841_v28, %v840_v23  ;;  %v549_v34 = vadd.f32 %v861_v30, %v508_v29 }
 0x105   :  { %v863_v19 = vpop.f32.mrf.mxu1 }
 0x106   :  { %v511_v35 = vadd.f32 %v842_v31, %v761_v27  ;;  %v864_v36 = vadd.f32 %v863_v19, %v862_v17 }
 0x107   :  { %v630_v21 = vpop.f32.mrf.mxu1 }
 0x108   :  { %v552_v41 = vadd.f32 %v864_v36, %v511_v35 }
 0x109   :  { %v902_v22 = vpop.f32.mrf.mxu1 }
 0x10b   :  { %v633_v24 = vpop.f32.mrf.mxu1 }
 0x10d   :  { %v903_v25 = vpop.f32.mrf.mxu1 }
 0x11d   :  { %v881_v32 = vpop.f32.mrf.mxu0 }
 0x11f   :  { %v882_v33 = vpop.f32.mrf.mxu0 }
 0x120   :  { %v883_v37 = vadd.f32 %v882_v33, %v881_v32 }
 0x121   :  { %v884_v38 = vpop.f32.mrf.mxu0 }
 0x122   :  { %v590_v39 = vadd.f32 %v883_v37, %v549_v34 }
 0x123   :  { %v885_v40 = vpop.f32.mrf.mxu0 }
 0x124   :  { %v886_v42 = vadd.f32 %v885_v40, %v884_v38  ;;  %v631_v43 = vadd.f32 %v630_v21, %v590_v39 }
 0x126   :  { %v593_v44 = vadd.f32 %v886_v42, %v552_v41  ;;  %v637_v46 = vmax.f32 %v631_v43, 0.0 }
 0x128   :  { %v634_v45 = vadd.f32 %v633_v24, %v593_v44 }
 0x12a   :  { %v638_v47 = vmax.f32 %v634_v45, 0.0 }
 0x12c   :  { %v639_v48 = vpack.c.bf16 %v638_v47, %v637_v46 }
 0x12e   :  { %921 = vmatmul.mubr.bf16.vlgmr.msra.gmra.mxu1 %v639_v48 }
 0x1ee   :  { %v745_v50 = vpop.f32.mrf.mxu1 }
 0x1ef   :  { %v746_v51 = vadd.f32 %v812_v49, %v745_v50 }
 0x1f0   :  { %v922_v52 = vpop.f32.mrf.mxu1 }
 0x1f1   :  { %753 = vst.msk [vmem:[%s1131_s5] sm:$0xff] %vm752_vm2, %v746_v51 }
 0x1f2   :  { %v748_v53 = vpop.f32.mrf.mxu1 }
 0x1f3   :  { %v749_v54 = vadd.f32 %v812_v49, %v748_v53 }
 0x1f4   :  { %v923_v55 = vpop.f32.mrf.mxu1 }
 0x1f5   :  { %754 = vst.msk [vmem:[%s1131_s5 + $0x8] sm:$0xff] %vm752_vm2, %v749_v54 }
 0x1f6   :  { %759 = vsyncpa [#allocation3], 1 }
 0x1f7   :  { %760 = vsyncpa [#allocation5], 1 }

</bundles_post_ra>
